<compile_context>
chip_gen: v7x
topology: tpu7x:2x2x1
jax: 0.10.0
libtpu: 0.0.40
codegen_flags: <defaults>
</compile_context>

<pallas_src>
import jax
import jax.numpy as jnp
from jax.experimental import pallas as pl
from jax.experimental.pallas import tpu as pltpu

LANE = 128      # padded feature width (>= input_size, hidden_size, num_classes)
SUBLANE = 8     # f32 sublane quantum


def _round_up(x, m):
    return (x + m - 1) // m * m


def bpnet_kernel(x_ref, w_ref, b_ref, o_ref):
    """One batch tile of the 3-layer MLP.

    x_ref: (TM, LANE)       bf16  zero-padded activations
    w_ref: (3, LANE, LANE)  bf16  zero-padded [w1, w2, w3] (stored (in, out))
    b_ref: (SUBLANE, LANE)  f32   rows 0..2 hold b1, b2, b3 (zero-padded)
    o_ref: (TM, LANE)       f32   lane-dense logits (cols >= num_classes are 0)
    """
    # fc1 + ReLU  (bf16 MXU inputs, f32 accumulation, f32 epilogue)
    h = jnp.dot(x_ref[...], w_ref[0], preferred_element_type=jnp.float32)
    h = jnp.maximum(h + b_ref[0:1, :], 0.0)
    # fc2 + ReLU
    h = jnp.dot(h.astype(jnp.bfloat16), w_ref[1], preferred_element_type=jnp.float32)
    h = jnp.maximum(h + b_ref[1:2, :], 0.0)
    # fc3 (logits, no activation) -- lane-dense store
    h = jnp.dot(h.astype(jnp.bfloat16), w_ref[2], preferred_element_type=jnp.float32)
    o_ref[...] = h + b_ref[2:3, :]


def pack_params(params):
    """Pad each (in, out) weight to (LANE, LANE) bf16 and stack -> (3, LANE, LANE);
    pack the three biases into one (SUBLANE, LANE) f32 buffer."""
    def pad_w(w):
        wi, wo = w.shape
        return jnp.pad(w, ((0, LANE - wi), (0, LANE - wo)))

    def pad_b(b):
        b = b.reshape(-1)
        return jnp.pad(b, (0, LANE - b.shape[0]))

    w_packed = jnp.stack(
        [pad_w(params["w1"]), pad_w(params["w2"]), pad_w(params["w3"])]
    ).astype(jnp.bfloat16)
    b_packed = jnp.stack(
        [pad_b(params["b1"]), pad_b(params["b2"]), pad_b(params["b3"])]
    )
    b_packed = jnp.pad(b_packed, ((0, SUBLANE - 3), (0, 0))).astype(jnp.float32)
    return w_packed, b_packed


def bpnet_forward(x, w_packed, b_packed, num_classes, *, tile_m=256):
    """x: (B, input_size) f32. Returns (B, num_classes) f32 logits."""
    B, in_features = x.shape
    TM = min(tile_m, _round_up(B, SUBLANE))
    B_pad = _round_up(B, TM)

    # Lane-dense, zero-padded bf16 activations (padding contributes 0 to the dots).
    x_p = jnp.pad(x, ((0, B_pad - B), (0, LANE - in_features))).astype(jnp.bfloat16)

    grid = (B_pad // TM,)
    out = pl.pallas_call(
        bpnet_kernel,
        out_shape=jax.ShapeDtypeStruct((B_pad, LANE), jnp.float32),
        grid=grid,
        in_specs=[
            # x streams over the batch (double-buffered by the pipeline).
            pl.BlockSpec((TM, LANE), lambda i: (i, 0)),
            # Weights / biases: constant block index -> VMEM-resident across tiles.
            pl.BlockSpec((3, LANE, LANE), lambda i: (0, 0, 0)),
            pl.BlockSpec((SUBLANE, LANE), lambda i: (0, 0)),
        ],
        out_specs=pl.BlockSpec((TM, LANE), lambda i: (i, 0)),
        compiler_params=pltpu.CompilerParams(
            dimension_semantics=("parallel",),
            vmem_limit_bytes=32 * 1024 * 1024,
        ),
    )(x_p, w_packed, b_packed)

    # Wrapper-side slice back to the real batch / class count (free layout plumbing).
    return out[:B, :num_classes]


def init_params(key, input_size=2, hidden_size=16, num_classes=4):
    """Deterministic init mimicking PyTorch's default (uniform +/- 1/sqrt(fan_in)).
    Weights stored as (in, out) so the kernel computes x @ W + b (== x @ W.T + b in torch)."""
    ks = jax.random.split(key, 6)

    def lin(kw, kb, fan_in, fan_out):
        bound = 1.0 / jnp.sqrt(float(fan_in))
        w = jax.random.uniform(kw, (fan_in, fan_out), jnp.float32, -bound, bound)
        b = jax.random.uniform(kb, (fan_out,), jnp.float32, -bound, bound)
        return w, b

    w1, b1 = lin(ks[0], ks[1], input_size, hidden_size)
    w2, b2 = lin(ks[2], ks[3], hidden_size, hidden_size)
    w3, b3 = lin(ks[4], ks[5], hidden_size, num_classes)
    return {"w1": w1, "b1": b1, "w2": w2, "b2": b2, "w3": w3, "b3": b3}


def bpnet_reference_f32(x, params):
    h = jnp.maximum(x @ params["w1"] + params["b1"], 0.0)
    h = jnp.maximum(h @ params["w2"] + params["b2"], 0.0)
    return h @ params["w3"] + params["b3"]


def bpnet_reference_bf16(x, w_packed, b_packed, num_classes):
    """Same math as the kernel (bf16 inputs, f32 accumulation) for a tight check."""
    B, in_features = x.shape
    xb = jnp.pad(x, ((0, 0), (0, LANE - in_features))).astype(jnp.bfloat16)
    h = jnp.dot(xb, w_packed[0], preferred_element_type=jnp.float32) + b_packed[0:1, :]
    h = jnp.maximum(h, 0.0)
    h = jnp.dot(h.astype(jnp.bfloat16), w_packed[1], preferred_element_type=jnp.float32) + b_packed[1:2, :]
    h = jnp.maximum(h, 0.0)
    h = jnp.dot(h.astype(jnp.bfloat16), w_packed[2], preferred_element_type=jnp.float32) + b_packed[2:3, :]
    return h[:, :num_classes]


if __name__ == "__main__":
    key = jax.random.PRNGKey(0)
    k_param, k_x = jax.random.split(key)

    input_size, hidden_size, num_classes = 2, 16, 4
    batch = 512  # -> grid of 2 batch tiles at TM=256 (exercises pipelining / megacore)

    params = init_params(k_param, input_size, hidden_size, num_classes)
    w_packed, b_packed = pack_params(params)
    x = jax.random.normal(k_x, (batch, input_size), jnp.float32)

    out = jax.block_until_ready(bpnet_forward(x, w_packed, b_packed, num_classes, tile_m=256))
    assert out.shape == (batch, num_classes), out.shape

    # Tight check vs a reference that uses the same bf16-in / f32-acc math.
    ref_bf16 = bpnet_reference_bf16(x, w_packed, b_packed, num_classes)
    assert jnp.allclose(out, ref_bf16, atol=1e-3, rtol=1e-3), "mismatch vs bf16 reference"

    # Sanity check vs the pure-f32 PyTorch-equivalent forward (loosened for bf16 cast).
    ref_f32 = bpnet_reference_f32(x, params)
    assert jnp.allclose(out, ref_f32, atol=5e-2, rtol=5e-2), "mismatch vs f32 reference"

    print("KERNEL_OK")
</pallas_src>

<mosaic_0001>
module attributes {stable_mosaic.version = 11 : i64} {
  func.func @bpnet_kernel(%arg0: i32, %arg1: memref<256x128xbf16, #tpu.memory_space<vmem>>, %arg2: memref<3x128x128xbf16, #tpu.memory_space<vmem>>, %arg3: memref<8x128xf32, #tpu.memory_space<vmem>>, %arg4: memref<256x128xf32, #tpu.memory_space<vmem>>) attributes {dimension_semantics = [#tpu.dimension_semantics<parallel>], iteration_bounds = array<i64: 2>, scalar_prefetch = 0 : i64, scratch_operands = 0 : i64, tpu.core_type = #tpu.core_type<tc>, window_params = [{transform_indices = @transform_0, window_bounds = array<i64: 256, 128>}, {pipeline_mode = #tpu.pipeline_mode<synchronous>, transform_indices = @transform_1, window_bounds = array<i64: 3, 128, 128>}, {pipeline_mode = #tpu.pipeline_mode<synchronous>, transform_indices = @transform_2, window_bounds = array<i64: 8, 128>}, {transform_indices = @transform_3, window_bounds = array<i64: 256, 128>}]} {
    %c0 = arith.constant 0 : index
    %c0_0 = arith.constant 0 : index
    %0 = vector.load %arg1[%c0, %c0_0] : memref<256x128xbf16, #tpu.memory_space<vmem>>, vector<256x128xbf16>
    %c0_1 = arith.constant 0 : index
    %c0_2 = arith.constant 0 : index
    %c0_3 = arith.constant 0 : index
    %1 = vector.load %arg2[%c0_1, %c0_2, %c0_3] : memref<3x128x128xbf16, #tpu.memory_space<vmem>>, vector<1x128x128xbf16>
    %2 = vector.shape_cast %1 : vector<1x128x128xbf16> to vector<128x128xbf16>
    %cst = arith.constant dense<0.000000e+00> : vector<256x128xf32>
    %3 = tpu.matmul %0, %2, %cst {dimension_numbers = #tpu.dot_dimension_numbers<[1], [0], [0], [1], [0, 0, 1, 1], [], []>} : vector<256x128xbf16>, vector<128x128xbf16>, vector<256x128xf32> -> vector<256x128xf32>
    %c0_4 = arith.constant 0 : index
    %c0_5 = arith.constant 0 : index
    %4 = vector.load %arg3[%c0_4, %c0_5] : memref<8x128xf32, #tpu.memory_space<vmem>>, vector<1x128xf32>
    %5 = vector.broadcast %4 : vector<1x128xf32> to vector<256x128xf32>
    %6 = arith.addf %3, %5 : vector<256x128xf32>
    %cst_6 = arith.constant 0.000000e+00 : f32
    %7 = vector.broadcast %cst_6 : f32 to vector<256x128xf32>
    %8 = arith.maximumf %6, %7 : vector<256x128xf32>
    %9 = arith.truncf %8 : vector<256x128xf32> to vector<256x128xbf16>
    %c1 = arith.constant 1 : index
    %c0_7 = arith.constant 0 : index
    %c0_8 = arith.constant 0 : index
    %10 = vector.load %arg2[%c1, %c0_7, %c0_8] : memref<3x128x128xbf16, #tpu.memory_space<vmem>>, vector<1x128x128xbf16>
    %11 = vector.shape_cast %10 : vector<1x128x128xbf16> to vector<128x128xbf16>
    %cst_9 = arith.constant dense<0.000000e+00> : vector<256x128xf32>
    %12 = tpu.matmul %9, %11, %cst_9 {dimension_numbers = #tpu.dot_dimension_numbers<[1], [0], [0], [1], [0, 0, 1, 1], [], []>} : vector<256x128xbf16>, vector<128x128xbf16>, vector<256x128xf32> -> vector<256x128xf32>
    %c1_10 = arith.constant 1 : index
    %c0_11 = arith.constant 0 : index
    %13 = vector.load %arg3[%c1_10, %c0_11] : memref<8x128xf32, #tpu.memory_space<vmem>>, vector<1x128xf32>
    %14 = vector.broadcast %13 : vector<1x128xf32> to vector<256x128xf32>
    %15 = arith.addf %12, %14 : vector<256x128xf32>
    %cst_12 = arith.constant 0.000000e+00 : f32
    %16 = vector.broadcast %cst_12 : f32 to vector<256x128xf32>
    %17 = arith.maximumf %15, %16 : vector<256x128xf32>
    %18 = arith.truncf %17 : vector<256x128xf32> to vector<256x128xbf16>
    %c2 = arith.constant 2 : index
    %c0_13 = arith.constant 0 : index
    %c0_14 = arith.constant 0 : index
    %19 = vector.load %arg2[%c2, %c0_13, %c0_14] : memref<3x128x128xbf16, #tpu.memory_space<vmem>>, vector<1x128x128xbf16>
    %20 = vector.shape_cast %19 : vector<1x128x128xbf16> to vector<128x128xbf16>
    %cst_15 = arith.constant dense<0.000000e+00> : vector<256x128xf32>
    %21 = tpu.matmul %18, %20, %cst_15 {dimension_numbers = #tpu.dot_dimension_numbers<[1], [0], [0], [1], [0, 0, 1, 1], [], []>} : vector<256x128xbf16>, vector<128x128xbf16>, vector<256x128xf32> -> vector<256x128xf32>
    %c2_16 = arith.constant 2 : index
    %c0_17 = arith.constant 0 : index
    %22 = vector.load %arg3[%c2_16, %c0_17] : memref<8x128xf32, #tpu.memory_space<vmem>>, vector<1x128xf32>
    %23 = vector.broadcast %22 : vector<1x128xf32> to vector<256x128xf32>
    %24 = arith.addf %21, %23 : vector<256x128xf32>
    %c0_18 = arith.constant 0 : index
    %c0_19 = arith.constant 0 : index
    %25 = vector.load %arg4[%c0_18, %c0_19] : memref<256x128xf32, #tpu.memory_space<vmem>>, vector<256x128xf32>
    tpu.vector_store %arg4[%c0_18, %c0_19], %24 {strides = array<i32>} : memref<256x128xf32, #tpu.memory_space<vmem>>, vector<256x128xf32>,
    return
  }
  func.func @transform_0(%arg0: i32) -> (i32, i32) {
    %c0_i32 = arith.constant 0 : i32
    %c0_i32_0 = arith.constant 0 : i32
    return %arg0, %c0_i32 : i32, i32
  }
  func.func @transform_1(%arg0: i32) -> (i32, i32, i32) {
    %c0_i32 = arith.constant 0 : i32
    %c0_i32_0 = arith.constant 0 : i32
    %c0_i32_1 = arith.constant 0 : i32
    %c0_i32_2 = arith.constant 0 : i32
    return %c0_i32, %c0_i32_0, %c0_i32_1 : i32, i32, i32
  }
  func.func @transform_2(%arg0: i32) -> (i32, i32) {
    %c0_i32 = arith.constant 0 : i32
    %c0_i32_0 = arith.constant 0 : i32
    %c0_i32_1 = arith.constant 0 : i32
    return %c0_i32, %c0_i32_0 : i32, i32
  }
  func.func @transform_3(%arg0: i32) -> (i32, i32) {
    %c0_i32 = arith.constant 0 : i32
    %c0_i32_0 = arith.constant 0 : i32
    return %arg0, %c0_i32 : i32, i32
  }
}

</mosaic_0001>

<bundles_post_ra>
// kernel: tpu_custom_call.1
= control target key start
LH: loop header
LB: loop body
LE: loop exit
PB: predicated region body
PF: predicated region fallthrough
CT: control target
= control target key end

     0   :  { %8 = vsyncpa [#allocation3], 0  ;;  %s2273_s0 = inlined_call_operand.hbm [shape: bf16[512,128], index: 0, kind: input, shape index: {}]   ;;  %s2274_s1 = inlined_call_operand.hbm [shape: bf16[3,128,128], index: 1, kind: input, shape index: {}]   ;;  %s2275_s2 = inlined_call_operand.hbm [shape: f32[8,128], index: 2, kind: input, shape index: {}]   ;;  %s2276_s3 = inlined_call_operand.hbm [shape: f32[512,128], index: 3, kind: output, shape index: {}]  }
   0x1   :  { %10 = vsyncpa [#allocation3 + $0x1], 0 }
   0x2   :  { %11 = vsyncpa [#allocation6], 0 }
   0x3   :  { %12 = vsyncpa [#allocation4], 0 }
   0x4   :  { %14 = vsyncpa [#allocation4 + $0x1], 0  ;;  %s1865_s12 = smov 0   ;;  %s1867_s13 = smov 0  }
   0x5   :  { %s1869_s14 = smov 0   ;;  %s1871_s15 = smov 0  }
   0x6 LB: > { %s1886_s16 = sadd.s32 4294967295, %s1835_s15   ;;  %s1273_s17 = sadd.s32 4294967294, %s1835_s15   ;;  %s1835_s15 = sphi %s1871_s15, %s2296_s15   ;;  %s1831_s14 = sphi %s1869_s14, %s2295_s14   ;;  %s1827_s13 = sphi %s1867_s13, %s2294_s13   ;;  %s1823_s12 = sphi %s1865_s12, %s2293_s12  }
   0x7   : > { %p40_p0 = scmp.ne.s32.totalorder %s1827_s13, %s1823_s12  ;;  %p2277_p1 = scmp.eq.s32.totalorder %s1886_s16, 0 }
   0x8   : > { %p112_p3 = scmp.eq.s32.totalorder %s1273_s17, 1  ;;  %p1274_p5 = scmp.ge.s32.totalorder %s1835_s15, 1 }
   0x9   : > { %p1895_p4 = por %p2277_p1, %p40_p0  ;;  %p119_p7 = scmp.lt.s32.totalorder %s1835_s15, 3 }
   0xa   : > { %p1900_p6 = por %p112_p3, %p40_p0  ;;  %s1837_s21 = smov [#allocation5]  }
   0xb   : > { %s2280_s18 = scalar_select %p1895_p4, 1, 0 }
   0xc   : > { %s2281_s19 = scalar_select %p1900_p6, 1, 0 }
   0xd   : > { %p1905_p8 = pnand %p1274_p5, %p119_p7  ;;  %s131_s22 = sshll.u32 %s1837_s21, 4  ;;  %s1909_s22 = int_to_ptr.vmem [resolvable:$true] %s131_s22 }
   0xe   : > { %s1838_s24 = smov [#allocation7]   ;;  %s1679_s28 = scalar_lea.hbm %s2274_s1, 3072 }
   0xf   : > { %p1580_p9 = pneg %p1905_p8  ;;  %s145_s25 = sshll.u32 %s1838_s24, 4  ;;  %s1920_s25 = int_to_ptr.vmem [resolvable:$true] %s145_s25 }
  0x10   : > { %p1680_p12 = scmp.ne.s32.totalorder %s2274_s1, %s1679_s28  ;;  %p1686_p5 = scmp.lt.u32.totalorder %s1679_s28, %s2274_s1 }
  0x11   : > { %p1916_p11 = pnand %p1580_p9, %p2277_p1 }
  0x13   : > { %p1681_p13 = pneg %p1916_p11 }
  0x15   : > { %p1682_p0 = pnand %p1681_p13, %p1680_p12 }
  0x17   : > { %p1683_p3 = pneg %p1682_p0 }
  0x19   : > { %p1688_p7 = pnand %p1686_p5, %p1683_p3 }
  0x1b   : > { %1691 = shalt.err (!%p1688_p7)
}
  0x1c   : > { %s1692_s6 = scalar_lea.vmem %s1909_s22, 3072  ;;  %p1700_p2 = scmp.lt.s32.totalorder %s1909_s22, %s1909_s22 }
  0x1d   : > { %p1693_p9 = scmp.ne.s32.totalorder %s1909_s22, %s1692_s6  ;;  %p1701_p12 = scmp.lt.s32.totalorder %s1692_s6, %s1692_s6 }
  0x1f   : > { %p1695_p10 = pnand %p1693_p9, %p1681_p13  ;;  %p1702_p0 = por %p1701_p12, %p1700_p2 }
  0x21   : > { %p1696_p1 = pneg %p1695_p10 }
  0x23   : > { %p1703_p6 = pnand %p1702_p0, %p1696_p1 }
  0x25   : > { %1706 = shalt.err (!%p1703_p6)
}
  0x26   : > { %s1839_s7 = smov 64   ;;  %s1840_s8 = smov 4  }
  0x27   : > { %1583 = dma.hbm_to_vmem [thread:$0]  (!%p1916_p11), %s2274_s1, 3072, %s1909_s22, [#allocation6], %s1839_s7, %s1839_s7, %s1840_s8  }
  0x28   : > { %s1707_s21 = scalar_lea.hbm %s2275_s2, 128 }
  0x29   : > { %p1708_p1 = scmp.ne.s32.totalorder %s2275_s2, %s1707_s21  ;;  %p1714_p10 = scmp.lt.u32.totalorder %s1707_s21, %s2275_s2 }
  0x2b   : > { %p1710_p2 = pnand %p1708_p1, %p1681_p13 }
  0x2d   : > { %p1711_p6 = pneg %p1710_p2 }
  0x2f   : > { %p1716_p3 = pnand %p1714_p10, %p1711_p6 }
  0x31   : > { %1719 = shalt.err (!%p1716_p3)
}
  0x32   : > { %s1720_s22 = scalar_lea.vmem %s1920_s25, 128  ;;  %p1728_p12 = scmp.lt.s32.totalorder %s1920_s25, %s1920_s25 }
  0x33   : > { %p1721_p5 = scmp.ne.s32.totalorder %s1920_s25, %s1720_s22  ;;  %p1729_p0 = scmp.lt.s32.totalorder %s1720_s22, %s1720_s22 }
  0x35   : > { %p1723_p7 = pnand %p1721_p5, %p1681_p13  ;;  %p1730_p1 = por %p1729_p0, %p1728_p12 }
  0x37   : > { %p1724_p9 = pneg %p1723_p7 }
  0x39   : > { %p1731_p2 = pnand %p1730_p1, %p1724_p9 }
  0x3b   : > { %1734 = shalt.err (!%p1731_p2)
}
  0x3c   : > { %1586 = dma.hbm_to_vmem [thread:$0]  (!%p1916_p11), %s2275_s2, 128, %s1920_s25, [#allocation6]  }
  0x3d   : > { %s1978_s4 = sadd.s32 1, %s1835_s15   ;;  %s27_s23 = sadd.s32 1, %s1831_s14 }
  0x3e   : > { %s24_s5 = ssub.s32 %s1835_s15, %s1978_s4  ;;  %p34_p13 = scmp.ne.s32.totalorder %s1831_s14, %s1827_s13 }
  0x3f   : > { %p25_p6 = scmp.eq.s32.totalorder %s24_s5, 0  ;;  %p35_p10 = scmp.eq.s32.totalorder %s1835_s15, 0 }
  0x40   : > { %p2284_p3 = scmp.eq.s32.totalorder %s1886_s16, 1  ;;  %p1597_p7 = scmp.lt.s32.totalorder %s1835_s15, 2 }
  0x41   : > { %s1994_s9 = scalar_select %p25_p6, %s1831_s14, %s27_s23  }
  0x42   : > { %p1988_p5 = por %p2284_p3, %p34_p13  ;;  %p36_p9 = por %p35_p10, %p34_p13 }
  0x43   : > { %s156_s10 = sand.u32 1, %s1831_s14   ;;  %s1334_s25 = sshll.u32 %s1835_s15, 11 }
  0x44   : > { %s2285_s6 = scalar_select %p1988_p5, 1, 0 }
  0x45   : > { %s1278_s11 = sshll.u32 %s156_s10, 7  ;;  %s2001_s24 = scalar_lea.hbm %s2273_s0, %s1334_s25 }
  0x46   : > { %s160_s26 = scalar_lea.vmem [#allocation2], %s1278_s11  ;;  %p2005_p11 = pnand %p1597_p7, %p36_p9 }
  0x47   : > { %s167_s27 = sshll.u32 %s160_s26, 4  ;;  %s2009_s22 = scalar_lea.sflag [#allocation3], %s156_s10  ;;  %s2003_s27 = int_to_ptr.vmem [resolvable:$true] %s167_s27 }
  0x48   : > { %s1735_s29 = scalar_lea.hbm %s2001_s24, 2048  ;;  %p1737_p0 = pneg %p2005_p11 }
  0x49   : > { %p1736_p12 = scmp.ne.s32.totalorder %s2001_s24, %s1735_s29  ;;  %s1740_s5 = scalar_lea.hbm %s2273_s0, 4096 }
  0x4a   : > { %p1741_p13 = scmp.lt.u32.totalorder %s2001_s24, %s2273_s0  ;;  %p1742_p6 = scmp.lt.u32.totalorder %s1740_s5, %s1735_s29 }
  0x4b   : > { %p1738_p1 = pnand %p1737_p0, %p1736_p12  ;;  %p1744_p3 = scmp.lt.u32.totalorder %s1735_s29, %s2001_s24 }
  0x4c   : > { %p1743_p10 = por %p1742_p6, %p1741_p13 }
  0x4d   : > { %p1739_p2 = pneg %p1738_p1 }
  0x4e   : > { %p1745_p7 = por %p1744_p3, %p1743_p10 }
  0x50   : > { %p1746_p9 = pnand %p1745_p7, %p1739_p2 }
  0x52   : > { %1749 = shalt.err (!%p1746_p9)
}
  0x53   : > { %s1750_s10 = scalar_lea.vmem %s2003_s27, 2048  ;;  %s1841_s17 = smov [#allocation2]  }
  0x54   : > { %p1751_p12 = scmp.ne.s32.totalorder %s2003_s27, %s1750_s10  ;;  %s1755_s21 = sshll.u32 %s1841_s17, 4  ;;  %s1756_s21 = int_to_ptr.vmem [resolvable:$false] %s1755_s21 }
  0x55   : > { %s1757_s26 = scalar_lea.vmem %s1756_s21, 4096  ;;  %p1758_p4 = scmp.lt.s32.totalorder %s2003_s27, %s1756_s21 }
  0x56   : > { %p1753_p1 = pnand %p1751_p12, %p1737_p0  ;;  %p1759_p13 = scmp.lt.s32.totalorder %s1757_s26, %s1750_s10 }
  0x58   : > { %p1754_p5 = pneg %p1753_p1  ;;  %p1760_p6 = por %p1759_p13, %p1758_p4 }
  0x5a   : > { %p1761_p10 = pnand %p1760_p6, %p1754_p5 }
  0x5c   : > { %1764 = shalt.err (!%p1761_p10)
}
  0x5d   : > { %1590 = dma.hbm_to_vmem [thread:$0]  (!%p2005_p11), %s2001_s24, 2048, %s2003_s27, %s2009_s22, %s1839_s7, %s1839_s7, %s1840_s8  }
  0x5e   : > { %179 = sbr.rel (%p1905_p8) target bundleno = 870 (0x366), region = 32  ;;  %s2043_s29 = sand.u32 (!%p1905_p8), 1, %s1827_s13  }
  0x5f   : > { %s1282_s30 = sshll.u32 (!%p1905_p8), %s2043_s29, 7  ;;  %s182_s23 = scalar_lea.sflag (!%p1905_p8), [#allocation3], %s2043_s29 }
  0x60   : > { %s2047_s5 = scalar_lea.vmem (!%p1905_p8), [#allocation2], %s1282_s30  ;;  %p2287_p4 = scmp.ne.s32.totalorder (!%p1905_p8), %s2280_s18, 0 }
  0x65   : > { %1810 = dma.done.wait (%p2287_p4), %s182_s23, 2048  }
  0x66   : > { %1812 = vsyncadd (%p2287_p4), %s182_s23, 4294965248  ;;  %p2288_p5 = scmp.eq.s32.totalorder %s1886_s16, 0 }
  0x68   : > { %1814 = dma.done.wait (%p2288_p5), [#allocation6], 3200   ;;  %p2289_p8 = pmov %p2288_p5 }
  0x69   : > { %v1639_v0 = vld [vmem:[#allocation5] sm:$0xff]   ;;  %v1640_v1 = vld [vmem:[#allocation5 + $0x8] sm:$0xff]   ;;  %v1641_v2 = vld [vmem:[#allocation5 + $0x10] sm:$0xff]   ;;  %s1285_s18 = sshll.u32 %s2043_s29, 8  ;;  %s1335_s7 = sshll.u32 %s1886_s16, 12 }
  0x6a   : > { %1816 = vsyncadd (%p2289_p8), [#allocation6], 4294964096  ;;  %1408 = vmatprep.subr.bf16.mxu0 %v1639_v0  ;;  %1552 = vmatprep.subr.bf16.mxu1 %v1639_v0  ;;  %v1642_v3 = vld [vmem:[#allocation5 + $0x18] sm:$0xff]   ;;  %v1647_v4 = vld [vmem:[%s2047_s5] sm:$0xff]   ;;  %s2158_s20 = scalar_lea.vmem [#allocation8], %s1285_s18  ;;  %s2223_s28 = scalar_lea.hbm %s2276_s3, %s1335_s7 }
  0x6b   : > { %1409 = vmatpush3.bf16.msra.mxu0 %v1639_v0  ;;  %1560 = vmatpush3.bf16.msra.mxu1 %v1639_v0  ;;  %v1643_v5 = vld [vmem:[#allocation5 + $0x20] sm:$0xff]   ;;  %v1644_v6 = vld [vmem:[#allocation5 + $0x28] sm:$0xff]   ;;  %v1645_v8 = vld [vmem:[#allocation5 + $0x30] sm:$0xff]   ;;  %s1181_s8 = sshll.u32 %s2158_s20, 4  ;;  %s1168_s16 = scalar_lea.sflag [#allocation4], %s2043_s29  ;;  %s2225_s8 = int_to_ptr.vmem [resolvable:$true] %s1181_s8 }
  0x6c   : > { %1410 = vmatprep.subr.bf16.mxu0 %v1640_v1  ;;  %1553 = vmatprep.subr.bf16.mxu1 %v1640_v1  ;;  %v1655_v7 = vld [vmem:[%s2047_s5 + $0x40] sm:$0xff]   ;;  %v1646_v9 = vld [vmem:[#allocation5 + $0x38] sm:$0xff]   ;;  %v1648_v10 = vld [vmem:[%s2047_s5 + $0x8] sm:$0xff]   ;;  %s1765_s22 = scalar_lea.vmem %s2225_s8, 4096  ;;  %p2290_p0 = scmp.ne.s32.totalorder %s2285_s6, 0 }
  0x6d   : > { %1424 = vmatprep.mubr.bf16.mxu0 %v1647_v4  ;;  %1440 = vmatprep.mubr.bf16.mxu1 %v1655_v7  ;;  %v1656_v11 = vld [vmem:[%s2047_s5 + $0x48] sm:$0xff]   ;;  %v1663_v12 = vld [vmem:[#allocation5 + $0x40] sm:$0xff]   ;;  %v1649_v13 = vld [vmem:[%s2047_s5 + $0x10] sm:$0xff]   ;;  %p1766_p11 = scmp.ne.s32.totalorder %s2225_s8, %s1765_s22  ;;  %s1842_s11 = smov [#allocation8]  }
  0x6e   : > { %v1657_v14 = vld [vmem:[%s2047_s5 + $0x50] sm:$0xff]   ;;  %v1664_v15 = vld [vmem:[#allocation5 + $0x48] sm:$0xff]   ;;  %v1650_v17 = vld [vmem:[%s2047_s5 + $0x18] sm:$0xff]   ;;  %s1769_s25 = sshll.u32 %s1842_s11, 4  ;;  %s1770_s25 = int_to_ptr.vmem [resolvable:$false] %s1769_s25 }
  0x6f   : > { %1411 = vmatpush3.bf16.msra.mxu0 %v1640_v1  ;;  %1561 = vmatpush3.bf16.msra.mxu1 %v1640_v1  ;;  %v1665_v16 = vld [vmem:[#allocation5 + $0x50] sm:$0xff]   ;;  %v1658_v18 = vld [vmem:[%s2047_s5 + $0x58] sm:$0xff]   ;;  %v1651_v19 = vld [vmem:[%s2047_s5 + $0x20] sm:$0xff]   ;;  %p1767_p2 = pnand %p1766_p11, %p2290_p0  ;;  %s1771_s10 = scalar_lea.vmem %s1770_s25, 8192 }
  0x70   : > { %1412 = vmatprep.subr.bf16.mxu0 %v1641_v2  ;;  %1554 = vmatprep.subr.bf16.mxu1 %v1641_v2  ;;  %v1659_v20 = vld [vmem:[%s2047_s5 + $0x60] sm:$0xff]   ;;  %v1666_v21 = vld [vmem:[#allocation5 + $0x58] sm:$0xff]   ;;  %v1652_v23 = vld [vmem:[%s2047_s5 + $0x28] sm:$0xff]   ;;  %p1772_p7 = scmp.lt.s32.totalorder %s2225_s8, %s1770_s25  ;;  %p1773_p9 = scmp.lt.s32.totalorder %s1771_s10, %s1765_s22 }
  0x71   : > { %v1667_v22 = vld [vmem:[#allocation5 + $0x60] sm:$0xff]   ;;  %v1660_v24 = vld [vmem:[%s2047_s5 + $0x68] sm:$0xff]   ;;  %v1653_v25 = vld [vmem:[%s2047_s5 + $0x30] sm:$0xff]   ;;  %p1768_p3 = pneg %p1767_p2 }
  0x72   : > { %v1661_v26 = vld [vmem:[%s2047_s5 + $0x70] sm:$0xff]   ;;  %v1668_v27 = vld [vmem:[#allocation5 + $0x68] sm:$0xff]   ;;  %v1654_v28 = vld [vmem:[%s2047_s5 + $0x38] sm:$0xff]   ;;  %p1774_p12 = por %p1773_p9, %p1772_p7 }
  0x73   : > { %1413 = vmatpush3.bf16.msra.mxu0 %v1641_v2  ;;  %1562 = vmatpush3.bf16.msra.mxu1 %v1641_v2  ;;  %v1662_v29 = vld [vmem:[%s2047_s5 + $0x78] sm:$0xff]   ;;  %v1669_v30 = vld [vmem:[#allocation5 + $0x70] sm:$0xff]   ;;  %v1671_v32 = vld [vmem:[#allocation5 + $0x80] sm:$0xff]  }
  0x74   : > { %1414 = vmatprep.subr.bf16.mxu0 %v1642_v3  ;;  %1555 = vmatprep.subr.bf16.mxu1 %v1642_v3  ;;  %v1670_v31 = vld [vmem:[#allocation5 + $0x78] sm:$0xff]   ;;  %v1672_v33 = vld [vmem:[#allocation5 + $0x88] sm:$0xff]   ;;  %v1673_v34 = vld [vmem:[#allocation5 + $0x90] sm:$0xff]   ;;  %p1775_p1 = pnand %p1774_p12, %p1768_p3 }
  0x75   : > { %v1674_v35 = vld [vmem:[#allocation5 + $0x98] sm:$0xff]   ;;  %v1675_v36 = vld [vmem:[#allocation5 + $0xa0] sm:$0xff]   ;;  %v1676_v37 = vld [vmem:[#allocation5 + $0xa8] sm:$0xff]  }
  0x76   : > { %v2073_v38 = vld [vmem:[#allocation7] ss:$0 sm:$0xff] }
  0x77   : > { %1415 = vmatpush3.bf16.msra.mxu0 %v1642_v3  ;;  %1563 = vmatpush3.bf16.msra.mxu1 %v1642_v3 }
  0x78   : > { %1416 = vmatprep.subr.bf16.mxu0 %v1643_v5  ;;  %1556 = vmatprep.subr.bf16.mxu1 %v1643_v5 }
  0x7b   : > { %1417 = vmatpush3.bf16.msra.mxu0 %v1643_v5  ;;  %1564 = vmatpush3.bf16.msra.mxu1 %v1643_v5 }
  0x7c   : > { %1418 = vmatprep.subr.bf16.mxu0 %v1644_v6  ;;  %1557 = vmatprep.subr.bf16.mxu1 %v1644_v6 }
  0x7f   : > { %1419 = vmatpush3.bf16.msra.mxu0 %v1644_v6  ;;  %1565 = vmatpush3.bf16.msra.mxu1 %v1644_v6 }
  0x80   : > { %1420 = vmatprep.subr.bf16.mxu0 %v1645_v8  ;;  %1558 = vmatprep.subr.bf16.mxu1 %v1645_v8 }
  0x83   : > { %1421 = vmatpush3.bf16.msra.mxu0 %v1645_v8  ;;  %1566 = vmatpush3.bf16.msra.mxu1 %v1645_v8 }
  0x84   : > { %1422 = vmatprep.subr.bf16.mxu0 %v1646_v9  ;;  %1559 = vmatprep.subr.bf16.mxu1 %v1646_v9 }
  0x87   : > { %1423 = vmatpush3.bf16.msra.mxu0 %v1646_v9  ;;  %1567 = vmatpush3.bf16.msra.mxu1 %v1646_v9 }
  0x88   : > { %1456 = vmatprep.subr.bf16.mxu1 %v1663_v12  ;;  %1504 = vmatprep.subr.bf16.mxu0 %v1671_v32 }
  0x8a   : > { %1425 = vmatmul.mubr.bf16.vlgmr.msra.gmra.mrb[0].mxu0 %v1648_v10  ;;  %1441 = vmatmul.mubr.bf16.vlgmr.msra.gmra.mrb[0].mxu1 %v1656_v11 }
  0x8b   : > { %1428 = vmatprep.mubr.bf16.mxu0 %v1649_v13  ;;  %1444 = vmatprep.mubr.bf16.mxu1 %v1657_v14 }
  0x8c   : > { %1457 = vmatpush3.bf16.msra.mxu1 %v1663_v12  ;;  %1505 = vmatpush3.bf16.msra.mxu0 %v1671_v32 }
  0x8d   : > { %1458 = vmatprep.subr.bf16.mxu1 %v1664_v15  ;;  %1506 = vmatprep.subr.bf16.mxu0 %v1672_v33 }
  0x90   : > { %1459 = vmatpush3.bf16.msra.mxu1 %v1664_v15  ;;  %1507 = vmatpush3.bf16.msra.mxu0 %v1672_v33 }
  0x91   : > { %1460 = vmatprep.subr.bf16.mxu1 %v1665_v16  ;;  %1508 = vmatprep.subr.bf16.mxu0 %v1673_v34 }
  0x92   : > { %1429 = vmatmul.mubr.bf16.gmra.mrb[4].mxu0 %v1650_v17  ;;  %1445 = vmatmul.mubr.bf16.gmra.mrb[4].mxu1 %v1658_v18 }
  0x93   : > { %1432 = vmatprep.mubr.bf16.mxu0 %v1651_v19  ;;  %1448 = vmatprep.mubr.bf16.mxu1 %v1659_v20 }
  0x94   : > { %1461 = vmatpush3.bf16.msra.mxu1 %v1665_v16  ;;  %1509 = vmatpush3.bf16.msra.mxu0 %v1673_v34 }
  0x95   : > { %1462 = vmatprep.subr.bf16.mxu1 %v1666_v21  ;;  %1510 = vmatprep.subr.bf16.mxu0 %v1674_v35 }
  0x98   : > { %1463 = vmatpush3.bf16.msra.mxu1 %v1666_v21  ;;  %1511 = vmatpush3.bf16.msra.mxu0 %v1674_v35 }
  0x99   : > { %1464 = vmatprep.subr.bf16.mxu1 %v1667_v22  ;;  %1512 = vmatprep.subr.bf16.mxu0 %v1675_v36 }
  0x9a   : > { %1433 = vmatmul.mubr.bf16.gmra.mrb[8].mxu0 %v1652_v23  ;;  %1449 = vmatmul.mubr.bf16.gmra.mrb[8].mxu1 %v1660_v24 }
  0x9b   : > { %1436 = vmatprep.mubr.bf16.mxu0 %v1653_v25  ;;  %1452 = vmatprep.mubr.bf16.mxu1 %v1661_v26 }
  0x9c   : > { %1465 = vmatpush3.bf16.msra.mxu1 %v1667_v22  ;;  %1513 = vmatpush3.bf16.msra.mxu0 %v1675_v36 }
  0x9d   : > { %1466 = vmatprep.subr.bf16.mxu1 %v1668_v27  ;;  %1514 = vmatprep.subr.bf16.mxu0 %v1676_v37 }
  0xa0   : > { %1467 = vmatpush3.bf16.msra.mxu1 %v1668_v27  ;;  %1515 = vmatpush3.bf16.msra.mxu0 %v1676_v37 }
  0xa1   : > { %1468 = vmatprep.subr.bf16.mxu1 %v1669_v30 }
  0xa2   : > { %1437 = vmatmul.mubr.bf16.gmra.mrb[12].mxu0 %v1654_v28  ;;  %1453 = vmatmul.mubr.bf16.gmra.mrb[12].mxu1 %v1662_v29 }
  0xa4   : > { %1469 = vmatpush3.bf16.msra.mxu1 %v1669_v30 }
  0xa5   : > { %1470 = vmatprep.subr.bf16.mxu1 %v1670_v31 }
  0xa8   : > { %1471 = vmatpush3.bf16.msra.mxu1 %v1670_v31 }
 0x15d   : > { %v1426_v39 = vpop.f32.mrb[0].mxu0  ;;  %v1442_v40 = vpop.f32.mrb[0].mxu1 }
 0x15e   : > { %v459_v41 = vadd.f32 %v1426_v39, %v2073_v38  ;;  %v450_v42 = vpop.f32.mrb[1].mxu0  ;;  %v523_v43 = vadd.f32 %v1442_v40, %v2073_v38  ;;  %v514_v44 = vpop.f32.mrb[1].mxu1 }
 0x15f   : > { %v451_v45 = vadd.f32 %v2073_v38, %v450_v42  ;;  %v1427_v46 = vpop.f32.mrb[2].mxu0  ;;  %v515_v47 = vadd.f32 %v2073_v38, %v514_v44  ;;  %v1443_v48 = vpop.f32.mrb[2].mxu1 }
 0x160   : > { %v462_v49 = vadd.f32 %v1427_v46, %v2073_v38  ;;  %v453_v50 = vpop.f32.mrb[3].mxu0  ;;  %v595_v51 = vmax.f32 %v523_v43, 0.0  ;;  %v526_v52 = vadd.f32 %v1443_v48, %v2073_v38  ;;  %v517_v53 = vpop.f32.mrb[3].mxu1  ;;  %v579_v57 = vmax.f32 %v459_v41, 0.0 }
 0x161   : > { %v454_v54 = vadd.f32 %v2073_v38, %v453_v50  ;;  %v593_v55 = vmax.f32 %v515_v47, 0.0  ;;  %v518_v56 = vadd.f32 %v2073_v38, %v517_v53  ;;  %v577_v60 = vmax.f32 %v451_v45, 0.0 }
 0x162   : > { %v580_v58 = vmax.f32 %v462_v49, 0.0  ;;  %v596_v59 = vmax.f32 %v526_v52, 0.0 }
 0x163   : > { %v578_v61 = vmax.f32 %v454_v54, 0.0  ;;  %v594_v62 = vmax.f32 %v518_v56, 0.0 }
 0x164   : > { %v610_v63 = vpack.c.bf16 %v580_v58, %v579_v57  ;;  %v2083_v0 = vpack.c.bf16 %v596_v59, %v595_v51 }
 0x165   : > { %v609_v1 = vpack.c.bf16 %v578_v61, %v577_v60  ;;  %v1430_v2 = vpop.f32.mrb[4].mxu0  ;;  %v2085_v3 = vpack.c.bf16 %v594_v62, %v593_v55  ;;  %v1446_v4 = vpop.f32.mrb[4].mxu1 }
 0x166   : > { %v475_v5 = vadd.f32 %v1430_v2, %v2073_v38  ;;  %v466_v6 = vpop.f32.mrb[5].mxu0  ;;  %v539_v7 = vadd.f32 %v1446_v4, %v2073_v38  ;;  %v530_v8 = vpop.f32.mrb[5].mxu1 }
 0x167   : > { %v467_v9 = vadd.f32 %v2073_v38, %v466_v6  ;;  %v1431_v10 = vpop.f32.mrb[6].mxu0  ;;  %1472 = vmatprep.mubr.bf16.mxu1 %v609_v1  ;;  %v531_v11 = vadd.f32 %v2073_v38, %v530_v8  ;;  %v1447_v12 = vpop.f32.mrb[6].mxu1 }
 0x168   : > { %v478_v13 = vadd.f32 %v1431_v10, %v2073_v38  ;;  %v469_v14 = vpop.f32.mrb[7].mxu0  ;;  %1473 = vmatmul.mubr.bf16.vlgmr.msra.gmra.mrb[16].mxu1 %v610_v63  ;;  %v599_v15 = vmax.f32 %v539_v7, 0.0  ;;  %v542_v16 = vadd.f32 %v1447_v12, %v2073_v38  ;;  %v533_v17 = vpop.f32.mrb[7].mxu1  ;;  %v583_v21 = vmax.f32 %v475_v5, 0.0 }
 0x169   : > { %v470_v18 = vadd.f32 %v2073_v38, %v469_v14  ;;  %v597_v19 = vmax.f32 %v531_v11, 0.0  ;;  %v534_v20 = vadd.f32 %v2073_v38, %v533_v17  ;;  %v581_v24 = vmax.f32 %v467_v9, 0.0 }
 0x16a   : > { %v584_v22 = vmax.f32 %v478_v13, 0.0  ;;  %v600_v23 = vmax.f32 %v542_v16, 0.0 }
 0x16b   : > { %v582_v25 = vmax.f32 %v470_v18, 0.0  ;;  %v598_v26 = vmax.f32 %v534_v20, 0.0 }
 0x16c   : > { %v612_v27 = vpack.c.bf16 %v584_v22, %v583_v21  ;;  %v2095_v28 = vpack.c.bf16 %v600_v23, %v599_v15 }
 0x16d   : > { %v611_v29 = vpack.c.bf16 %v582_v25, %v581_v24  ;;  %v1434_v30 = vpop.f32.mrb[8].mxu0  ;;  %v2097_v31 = vpack.c.bf16 %v598_v26, %v597_v19  ;;  %v1450_v32 = vpop.f32.mrb[8].mxu1  ;;  %v1678_v26 = vld [vmem:[#allocation5 + $0xb8] sm:$0xff]  }
 0x16e   : > { %v491_v33 = vadd.f32 %v1434_v30, %v2073_v38  ;;  %v482_v34 = vpop.f32.mrb[9].mxu0  ;;  %v555_v35 = vadd.f32 %v1450_v32, %v2073_v38  ;;  %v546_v36 = vpop.f32.mrb[9].mxu1 }
 0x16f   : > { %v483_v37 = vadd.f32 %v2073_v38, %v482_v34  ;;  %v1435_v39 = vpop.f32.mrb[10].mxu0  ;;  %1476 = vmatprep.mubr.bf16.mxu1 %v611_v29  ;;  %v547_v40 = vadd.f32 %v2073_v38, %v546_v36  ;;  %v1451_v41 = vpop.f32.mrb[10].mxu1 }
 0x170   : > { %v494_v42 = vadd.f32 %v1435_v39, %v2073_v38  ;;  %v485_v43 = vpop.f32.mrb[11].mxu0  ;;  %1477 = vmatmul.mubr.bf16.gmra.mrb[20].mxu1 %v612_v27  ;;  %v603_v44 = vmax.f32 %v555_v35, 0.0  ;;  %v558_v45 = vadd.f32 %v1451_v41, %v2073_v38  ;;  %v549_v46 = vpop.f32.mrb[11].mxu1  ;;  %v587_v50 = vmax.f32 %v491_v33, 0.0  ;;  %v2119_v27 = vld [vmem:[#allocation7 + $0x1] ss:$0 sm:$0xff] }
 0x171   : > { %v486_v47 = vadd.f32 %v2073_v38, %v485_v43  ;;  %v601_v48 = vmax.f32 %v547_v40, 0.0  ;;  %v550_v49 = vadd.f32 %v2073_v38, %v549_v46  ;;  %v585_v53 = vmax.f32 %v483_v37, 0.0 }
 0x172   : > { %v588_v51 = vmax.f32 %v494_v42, 0.0  ;;  %v604_v52 = vmax.f32 %v558_v45, 0.0 }
 0x173   : > { %v586_v54 = vmax.f32 %v486_v47, 0.0  ;;  %v602_v55 = vmax.f32 %v550_v49, 0.0 }
 0x174   : > { %v614_v56 = vpack.c.bf16 %v588_v51, %v587_v50  ;;  %v622_v57 = vpack.c.bf16 %v604_v52, %v603_v44 }
 0x175   : > { %v613_v58 = vpack.c.bf16 %v586_v54, %v585_v53  ;;  %v1438_v59 = vpop.f32.mrb[12].mxu0  ;;  %v621_v60 = vpack.c.bf16 %v602_v55, %v601_v48  ;;  %v1454_v61 = vpop.f32.mrb[12].mxu1 }
 0x176   : > { %v507_v62 = vadd.f32 %v1438_v59, %v2073_v38  ;;  %v498_v63 = vpop.f32.mrb[13].mxu0  ;;  %v571_v1 = vadd.f32 %v1454_v61, %v2073_v38  ;;  %v562_v2 = vpop.f32.mrb[13].mxu1 }
 0x177   : > { %v499_v4 = vadd.f32 %v2073_v38, %v498_v63  ;;  %v1439_v5 = vpop.f32.mrb[14].mxu0  ;;  %1480 = vmatprep.mubr.bf16.mxu1 %v613_v58  ;;  %v563_v6 = vadd.f32 %v2073_v38, %v562_v2  ;;  %v1455_v7 = vpop.f32.mrb[14].mxu1 }
 0x178   : > { %v510_v8 = vadd.f32 %v1439_v5, %v2073_v38  ;;  %v501_v9 = vpop.f32.mrb[15].mxu0  ;;  %1481 = vmatmul.mubr.bf16.gmra.mrb[24].mxu1 %v614_v56  ;;  %v607_v10 = vmax.f32 %v571_v1, 0.0  ;;  %v574_v11 = vadd.f32 %v1455_v7, %v2073_v38  ;;  %v565_v12 = vpop.f32.mrb[15].mxu1  ;;  %v591_v16 = vmax.f32 %v507_v62, 0.0 }
 0x179   : > { %v502_v13 = vadd.f32 %v2073_v38, %v501_v9  ;;  %v605_v14 = vmax.f32 %v563_v6, 0.0  ;;  %v566_v15 = vadd.f32 %v2073_v38, %v565_v12  ;;  %v589_v19 = vmax.f32 %v499_v4, 0.0  ;;  %v1677_v38 = vld [vmem:[#allocation5 + $0xb0] sm:$0xff]  }
 0x17a   : > { %v592_v17 = vmax.f32 %v510_v8, 0.0  ;;  %v608_v18 = vmax.f32 %v574_v11, 0.0  ;;  %1516 = vmatprep.subr.bf16.mxu0 %v1677_v38 }
 0x17b   : > { %v590_v20 = vmax.f32 %v502_v13, 0.0  ;;  %v606_v21 = vmax.f32 %v566_v15, 0.0  ;;  %1517 = vmatpush3.bf16.msra.mxu0 %v1677_v38 }
 0x17c   : > { %v616_v22 = vpack.c.bf16 %v592_v17, %v591_v16  ;;  %v624_v23 = vpack.c.bf16 %v608_v18, %v607_v10  ;;  %1518 = vmatprep.subr.bf16.mxu0 %v1678_v26 }
 0x17d   : > { %v615_v24 = vpack.c.bf16 %v590_v20, %v589_v19  ;;  %v623_v25 = vpack.c.bf16 %v606_v21, %v605_v14 }
 0x17f   : > { %1484 = vmatprep.mubr.bf16.mxu1 %v615_v24  ;;  %1519 = vmatpush3.bf16.msra.mxu0 %v1678_v26 }
 0x180   : > { %1485 = vmatmul.mubr.bf16.gmra.mrb[28].mxu1 %v616_v22 }
 0x181   : > { %1488 = vmatprep.mubr.bf16.mxu1 %v2085_v3 }
 0x188   : > { %1489 = vmatmul.mubr.bf16.gmra.mrb[32].mxu1 %v2083_v0 }
 0x189   : > { %1492 = vmatprep.mubr.bf16.mxu1 %v2097_v31 }
 0x190   : > { %1493 = vmatmul.mubr.bf16.gmra.mrb[36].mxu1 %v2095_v28 }
 0x191   : > { %1496 = vmatprep.mubr.bf16.mxu1 %v621_v60 }
 0x198   : > { %1497 = vmatmul.mubr.bf16.gmra.mrb[40].mxu1 %v622_v57 }
 0x199   : > { %1500 = vmatprep.mubr.bf16.mxu1 %v623_v25 }
 0x1a0   : > { %1501 = vmatmul.mubr.bf16.gmra.mrb[44].mxu1 %v624_v23 }
 0x23b   : > { %v1474_v29 = vpop.f32.mrb[16].mxu1 }
 0x23c   : > { %v738_v3 = vadd.f32 %v1474_v29, %v2119_v27  ;;  %v729_v0 = vpop.f32.mrb[17].mxu1 }
 0x23d   : > { %v730_v30 = vadd.f32 %v2119_v27, %v729_v0  ;;  %v1475_v31 = vpop.f32.mrb[18].mxu1 }
 0x23e   : > { %v741_v28 = vadd.f32 %v1475_v31, %v2119_v27  ;;  %v732_v32 = vpop.f32.mrb[19].mxu1  ;;  %v858_v34 = vmax.f32 %v738_v3, 0.0 }
 0x23f   : > { %v733_v33 = vadd.f32 %v2119_v27, %v732_v32  ;;  %v856_v36 = vmax.f32 %v730_v30, 0.0 }
 0x240   : > { %v859_v35 = vmax.f32 %v741_v28, 0.0 }
 0x241   : > { %v857_v37 = vmax.f32 %v733_v33, 0.0 }
 0x242   : > { %v889_v39 = vpack.c.bf16 %v859_v35, %v858_v34 }
 0x243   : > { %v888_v40 = vpack.c.bf16 %v857_v37, %v856_v36  ;;  %v1478_v41 = vpop.f32.mrb[20].mxu1 }
 0x244   : > { %v754_v42 = vadd.f32 %v1478_v41, %v2119_v27  ;;  %v745_v43 = vpop.f32.mrb[21].mxu1 }
 0x245   : > { %v746_v44 = vadd.f32 %v2119_v27, %v745_v43  ;;  %v1479_v45 = vpop.f32.mrb[22].mxu1  ;;  %1520 = vmatprep.mubr.bf16.mxu0 %v888_v40 }
 0x246   : > { %v757_v46 = vadd.f32 %v1479_v45, %v2119_v27  ;;  %v748_v47 = vpop.f32.mrb[23].mxu1  ;;  %1521 = vmatmul.mubr.bf16.vlgmr.msra.gmra.mrb[16].mxu0 %v889_v39  ;;  %v862_v49 = vmax.f32 %v754_v42, 0.0 }
 0x247   : > { %v749_v48 = vadd.f32 %v2119_v27, %v748_v47  ;;  %v860_v51 = vmax.f32 %v746_v44, 0.0 }
 0x248   : > { %v863_v50 = vmax.f32 %v757_v46, 0.0 }
 0x249   : > { %v861_v52 = vmax.f32 %v749_v48, 0.0 }
 0x24a   : > { %v891_v53 = vpack.c.bf16 %v863_v50, %v862_v49 }
 0x24b   : > { %v890_v54 = vpack.c.bf16 %v861_v52, %v860_v51  ;;  %v1482_v55 = vpop.f32.mrb[24].mxu1 }
 0x24c   : > { %v770_v56 = vadd.f32 %v1482_v55, %v2119_v27  ;;  %v761_v57 = vpop.f32.mrb[25].mxu1 }
 0x24d   : > { %v762_v58 = vadd.f32 %v2119_v27, %v761_v57  ;;  %v1483_v59 = vpop.f32.mrb[26].mxu1  ;;  %1524 = vmatprep.mubr.bf16.mxu0 %v890_v54 }
 0x24e   : > { %v773_v60 = vadd.f32 %v1483_v59, %v2119_v27  ;;  %v764_v61 = vpop.f32.mrb[27].mxu1  ;;  %1525 = vmatmul.mubr.bf16.gmra.mrb[20].mxu0 %v891_v53  ;;  %v866_v63 = vmax.f32 %v770_v56, 0.0 }
 0x24f   : > { %v765_v62 = vadd.f32 %v2119_v27, %v764_v61  ;;  %v864_v2 = vmax.f32 %v762_v58, 0.0 }
 0x250   : > { %v867_v1 = vmax.f32 %v773_v60, 0.0 }
 0x251   : > { %v865_v4 = vmax.f32 %v765_v62, 0.0 }
 0x252   : > { %v893_v5 = vpack.c.bf16 %v867_v1, %v866_v63 }
 0x253   : > { %v892_v6 = vpack.c.bf16 %v865_v4, %v864_v2  ;;  %v1486_v7 = vpop.f32.mrb[28].mxu1 }
 0x254   : > { %v786_v8 = vadd.f32 %v1486_v7, %v2119_v27  ;;  %v777_v9 = vpop.f32.mrb[29].mxu1 }
 0x255   : > { %v778_v10 = vadd.f32 %v2119_v27, %v777_v9  ;;  %v1487_v11 = vpop.f32.mrb[30].mxu1  ;;  %1528 = vmatprep.mubr.bf16.mxu0 %v892_v6 }
 0x256   : > { %v789_v12 = vadd.f32 %v1487_v11, %v2119_v27  ;;  %v780_v13 = vpop.f32.mrb[31].mxu1  ;;  %1529 = vmatmul.mubr.bf16.gmra.mrb[24].mxu0 %v893_v5  ;;  %v870_v15 = vmax.f32 %v786_v8, 0.0 }
 0x257   : > { %v781_v14 = vadd.f32 %v2119_v27, %v780_v13  ;;  %v868_v17 = vmax.f32 %v778_v10, 0.0 }
 0x258   : > { %v871_v16 = vmax.f32 %v789_v12, 0.0 }
 0x259   : > { %v869_v18 = vmax.f32 %v781_v14, 0.0  ;;  %v2154_v14 = vld [vmem:[#allocation7 + $0x2] ss:$0 sm:$0xff] }
 0x25a   : > { %v895_v19 = vpack.c.bf16 %v871_v16, %v870_v15 }
 0x25b   : > { %v894_v20 = vpack.c.bf16 %v869_v18, %v868_v17  ;;  %v1490_v21 = vpop.f32.mrb[32].mxu1 }
 0x25c   : > { %v802_v22 = vadd.f32 %v1490_v21, %v2119_v27  ;;  %v793_v23 = vpop.f32.mrb[33].mxu1 }
 0x25d   : > { %v794_v24 = vadd.f32 %v2119_v27, %v793_v23  ;;  %v1491_v25 = vpop.f32.mrb[34].mxu1  ;;  %1532 = vmatprep.mubr.bf16.mxu0 %v894_v20 }
 0x25e   : > { %v805_v38 = vadd.f32 %v1491_v25, %v2119_v27  ;;  %v796_v26 = vpop.f32.mrb[35].mxu1  ;;  %1533 = vmatmul.mubr.bf16.gmra.mrb[28].mxu0 %v895_v19  ;;  %v874_v3 = vmax.f32 %v802_v22, 0.0 }
 0x25f   : > { %v797_v29 = vadd.f32 %v2119_v27, %v796_v26  ;;  %v872_v30 = vmax.f32 %v794_v24, 0.0 }
 0x260   : > { %v875_v0 = vmax.f32 %v805_v38, 0.0 }
 0x261   : > { %v873_v31 = vmax.f32 %v797_v29, 0.0 }
 0x262   : > { %v897_v28 = vpack.c.bf16 %v875_v0, %v874_v3 }
 0x263   : > { %v896_v32 = vpack.c.bf16 %v873_v31, %v872_v30  ;;  %v1494_v33 = vpop.f32.mrb[36].mxu1 }
 0x264   : > { %v818_v34 = vadd.f32 %v1494_v33, %v2119_v27  ;;  %v809_v35 = vpop.f32.mrb[37].mxu1 }
 0x265   : > { %v810_v36 = vadd.f32 %v2119_v27, %v809_v35  ;;  %v1495_v37 = vpop.f32.mrb[38].mxu1  ;;  %1536 = vmatprep.mubr.bf16.mxu0 %v896_v32 }
 0x266   : > { %v821_v39 = vadd.f32 %v1495_v37, %v2119_v27  ;;  %v812_v40 = vpop.f32.mrb[39].mxu1  ;;  %1537 = vmatmul.mubr.bf16.gmra.mrb[32].mxu0 %v897_v28  ;;  %v878_v42 = vmax.f32 %v818_v34, 0.0 }
 0x267   : > { %v813_v41 = vadd.f32 %v2119_v27, %v812_v40  ;;  %v876_v44 = vmax.f32 %v810_v36, 0.0 }
 0x268   : > { %v879_v43 = vmax.f32 %v821_v39, 0.0 }
 0x269   : > { %v877_v45 = vmax.f32 %v813_v41, 0.0 }
 0x26a   : > { %v899_v46 = vpack.c.bf16 %v879_v43, %v878_v42 }
 0x26b   : > { %v898_v47 = vpack.c.bf16 %v877_v45, %v876_v44  ;;  %v1498_v48 = vpop.f32.mrb[40].mxu1 }
 0x26c   : > { %v834_v49 = vadd.f32 %v1498_v48, %v2119_v27  ;;  %v825_v50 = vpop.f32.mrb[41].mxu1 }
 0x26d   : > { %v826_v51 = vadd.f32 %v2119_v27, %v825_v50  ;;  %v1499_v52 = vpop.f32.mrb[42].mxu1  ;;  %1540 = vmatprep.mubr.bf16.mxu0 %v898_v47 }
 0x26e   : > { %v837_v53 = vadd.f32 %v1499_v52, %v2119_v27  ;;  %v828_v54 = vpop.f32.mrb[43].mxu1  ;;  %1541 = vmatmul.mubr.bf16.gmra.mrb[36].mxu0 %v899_v46  ;;  %v882_v56 = vmax.f32 %v834_v49, 0.0 }
 0x26f   : > { %v829_v55 = vadd.f32 %v2119_v27, %v828_v54  ;;  %v880_v58 = vmax.f32 %v826_v51, 0.0 }
 0x270   : > { %v883_v57 = vmax.f32 %v837_v53, 0.0 }
 0x271   : > { %v881_v59 = vmax.f32 %v829_v55, 0.0 }
 0x272   : > { %v901_v60 = vpack.c.bf16 %v883_v57, %v882_v56 }
 0x273   : > { %v900_v61 = vpack.c.bf16 %v881_v59, %v880_v58  ;;  %v1502_v62 = vpop.f32.mrb[44].mxu1 }
 0x274   : > { %v850_v63 = vadd.f32 %v1502_v62, %v2119_v27  ;;  %v841_v1 = vpop.f32.mrb[45].mxu1 }
 0x275   : > { %v842_v2 = vadd.f32 %v2119_v27, %v841_v1  ;;  %v1503_v4 = vpop.f32.mrb[46].mxu1  ;;  %1544 = vmatprep.mubr.bf16.mxu0 %v900_v61 }
 0x276   : > { %v853_v5 = vadd.f32 %v1503_v4, %v2119_v27  ;;  %v844_v6 = vpop.f32.mrb[47].mxu1  ;;  %1545 = vmatmul.mubr.bf16.gmra.mrb[40].mxu0 %v901_v60  ;;  %v886_v8 = vmax.f32 %v850_v63, 0.0 }
 0x277   : > { %v845_v7 = vadd.f32 %v2119_v27, %v844_v6  ;;  %v884_v10 = vmax.f32 %v842_v2, 0.0 }
 0x278   : > { %v887_v9 = vmax.f32 %v853_v5, 0.0 }
 0x279   : > { %v885_v11 = vmax.f32 %v845_v7, 0.0 }
 0x27a   : > { %v903_v12 = vpack.c.bf16 %v887_v9, %v886_v8 }
 0x27b   : > { %v902_v13 = vpack.c.bf16 %v885_v11, %v884_v10 }
 0x27d   : > { %1548 = vmatprep.mubr.bf16.mxu0 %v902_v13 }
 0x27e   : > { %1549 = vmatmul.mubr.bf16.gmra.mrb[44].mxu0 %v903_v12 }
 0x319   : > { %v1522_v15 = vpop.f32.mrb[16].mxu0 }
 0x31a   : > { %v1017_v16 = vadd.f32 %v1522_v15, %v2154_v14  ;;  %v1008_v17 = vpop.f32.mrb[17].mxu0 }
 0x31b   : > { %v1009_v18 = vadd.f32 %v2154_v14, %v1008_v17  ;;  %v1523_v19 = vpop.f32.mrb[18].mxu0 }
 0x31c   : > { %1137 = vst [vmem:[%s2158_s20 + $0x10] sm:$0xff] %v1017_v16  ;;  %v1020_v27 = vadd.f32 %v1523_v19, %v2154_v14  ;;  %v1011_v20 = vpop.f32.mrb[19].mxu0 }
 0x31d   : > { %1135 = vst [vmem:[%s2158_s20] sm:$0xff] %v1009_v18  ;;  %v1012_v21 = vadd.f32 %v2154_v14, %v1011_v20 }
 0x31e   : > { %1138 = vst [vmem:[%s2158_s20 + $0x18] sm:$0xff] %v1020_v27 }
 0x31f   : > { %1136 = vst [vmem:[%s2158_s20 + $0x8] sm:$0xff] %v1012_v21 }
 0x321   : > { %v1526_v22 = vpop.f32.mrb[20].mxu0 }
 0x322   : > { %v1033_v23 = vadd.f32 %v1526_v22, %v2154_v14  ;;  %v1024_v24 = vpop.f32.mrb[21].mxu0 }
 0x323   : > { %v1025_v25 = vadd.f32 %v2154_v14, %v1024_v24  ;;  %v1527_v38 = vpop.f32.mrb[22].mxu0 }
 0x324   : > { %1141 = vst [vmem:[%s2158_s20 + $0x30] sm:$0xff] %v1033_v23  ;;  %v1036_v26 = vadd.f32 %v1527_v38, %v2154_v14  ;;  %v1027_v29 = vpop.f32.mrb[23].mxu0 }
 0x325   : > { %1139 = vst [vmem:[%s2158_s20 + $0x20] sm:$0xff] %v1025_v25  ;;  %v1028_v3 = vadd.f32 %v2154_v14, %v1027_v29 }
 0x326   : > { %1142 = vst [vmem:[%s2158_s20 + $0x38] sm:$0xff] %v1036_v26 }
 0x327   : > { %1140 = vst [vmem:[%s2158_s20 + $0x28] sm:$0xff] %v1028_v3 }
 0x329   : > { %v1530_v0 = vpop.f32.mrb[24].mxu0 }
 0x32a   : > { %v1049_v30 = vadd.f32 %v1530_v0, %v2154_v14  ;;  %v1040_v31 = vpop.f32.mrb[25].mxu0 }
 0x32b   : > { %v1041_v28 = vadd.f32 %v2154_v14, %v1040_v31  ;;  %v1531_v32 = vpop.f32.mrb[26].mxu0 }
 0x32c   : > { %1145 = vst [vmem:[%s2158_s20 + $0x50] sm:$0xff] %v1049_v30  ;;  %v1052_v33 = vadd.f32 %v1531_v32, %v2154_v14  ;;  %v1043_v34 = vpop.f32.mrb[27].mxu0 }
 0x32d   : > { %1143 = vst [vmem:[%s2158_s20 + $0x40] sm:$0xff] %v1041_v28  ;;  %v1044_v35 = vadd.f32 %v2154_v14, %v1043_v34 }
 0x32e   : > { %1146 = vst [vmem:[%s2158_s20 + $0x58] sm:$0xff] %v1052_v33 }
 0x32f   : > { %1144 = vst [vmem:[%s2158_s20 + $0x48] sm:$0xff] %v1044_v35 }
 0x331   : > { %v1534_v36 = vpop.f32.mrb[28].mxu0 }
 0x332   : > { %v1065_v37 = vadd.f32 %v1534_v36, %v2154_v14  ;;  %v1056_v39 = vpop.f32.mrb[29].mxu0 }
 0x333   : > { %v1057_v40 = vadd.f32 %v2154_v14, %v1056_v39  ;;  %v1535_v41 = vpop.f32.mrb[30].mxu0 }
 0x334   : > { %1149 = vst [vmem:[%s2158_s20 + $0x70] sm:$0xff] %v1065_v37  ;;  %v1068_v42 = vadd.f32 %v1535_v41, %v2154_v14  ;;  %v1059_v43 = vpop.f32.mrb[31].mxu0 }
 0x335   : > { %1147 = vst [vmem:[%s2158_s20 + $0x60] sm:$0xff] %v1057_v40  ;;  %v1060_v44 = vadd.f32 %v2154_v14, %v1059_v43 }
 0x336   : > { %1150 = vst [vmem:[%s2158_s20 + $0x78] sm:$0xff] %v1068_v42 }
 0x337   : > { %1148 = vst [vmem:[%s2158_s20 + $0x68] sm:$0xff] %v1060_v44 }
 0x339   : > { %v1538_v45 = vpop.f32.mrb[32].mxu0 }
 0x33a   : > { %v1081_v46 = vadd.f32 %v1538_v45, %v2154_v14  ;;  %v1072_v47 = vpop.f32.mrb[33].mxu0 }
 0x33b   : > { %v1073_v48 = vadd.f32 %v2154_v14, %v1072_v47  ;;  %v1539_v49 = vpop.f32.mrb[34].mxu0 }
 0x33c   : > { %1153 = vst [vmem:[%s2158_s20 + $0x90] sm:$0xff] %v1081_v46  ;;  %v1084_v50 = vadd.f32 %v1539_v49, %v2154_v14  ;;  %v1075_v51 = vpop.f32.mrb[35].mxu0 }
 0x33d   : > { %1151 = vst [vmem:[%s2158_s20 + $0x80] sm:$0xff] %v1073_v48  ;;  %v1076_v52 = vadd.f32 %v2154_v14, %v1075_v51 }
 0x33e   : > { %1154 = vst [vmem:[%s2158_s20 + $0x98] sm:$0xff] %v1084_v50 }
 0x33f   : > { %1152 = vst [vmem:[%s2158_s20 + $0x88] sm:$0xff] %v1076_v52 }
 0x341   : > { %v1542_v53 = vpop.f32.mrb[36].mxu0 }
 0x342   : > { %v1097_v54 = vadd.f32 %v1542_v53, %v2154_v14  ;;  %v1088_v55 = vpop.f32.mrb[37].mxu0 }
 0x343   : > { %v1089_v56 = vadd.f32 %v2154_v14, %v1088_v55  ;;  %v1543_v57 = vpop.f32.mrb[38].mxu0 }
 0x344   : > { %1157 = vst [vmem:[%s2158_s20 + $0xb0] sm:$0xff] %v1097_v54  ;;  %v1100_v58 = vadd.f32 %v1543_v57, %v2154_v14  ;;  %v1091_v59 = vpop.f32.mrb[39].mxu0 }
 0x345   : > { %1155 = vst [vmem:[%s2158_s20 + $0xa0] sm:$0xff] %v1089_v56  ;;  %v1092_v60 = vadd.f32 %v2154_v14, %v1091_v59 }
 0x346   : > { %1158 = vst [vmem:[%s2158_s20 + $0xb8] sm:$0xff] %v1100_v58 }
 0x347   : > { %1156 = vst [vmem:[%s2158_s20 + $0xa8] sm:$0xff] %v1092_v60 }
 0x349   : > { %v1546_v61 = vpop.f32.mrb[40].mxu0 }
 0x34a   : > { %v1113_v62 = vadd.f32 %v1546_v61, %v2154_v14  ;;  %v1104_v63 = vpop.f32.mrb[41].mxu0 }
 0x34b   : > { %v1105_v1 = vadd.f32 %v2154_v14, %v1104_v63  ;;  %v1547_v2 = vpop.f32.mrb[42].mxu0 }
 0x34c   : > { %1161 = vst [vmem:[%s2158_s20 + $0xd0] sm:$0xff] %v1113_v62  ;;  %v1116_v4 = vadd.f32 %v1547_v2, %v2154_v14  ;;  %v1107_v5 = vpop.f32.mrb[43].mxu0 }
 0x34d   : > { %1159 = vst [vmem:[%s2158_s20 + $0xc0] sm:$0xff] %v1105_v1  ;;  %v1108_v6 = vadd.f32 %v2154_v14, %v1107_v5 }
 0x34e   : > { %1162 = vst [vmem:[%s2158_s20 + $0xd8] sm:$0xff] %v1116_v4 }
 0x34f   : > { %1160 = vst [vmem:[%s2158_s20 + $0xc8] sm:$0xff] %v1108_v6 }
 0x351   : > { %v1550_v7 = vpop.f32.mrb[44].mxu0 }
 0x352   : > { %v1129_v8 = vadd.f32 %v1550_v7, %v2154_v14  ;;  %v1120_v9 = vpop.f32.mrb[45].mxu0 }
 0x353   : > { %v1121_v10 = vadd.f32 %v2154_v14, %v1120_v9  ;;  %v1551_v11 = vpop.f32.mrb[46].mxu0 }
 0x354   : > { %1165 = vst [vmem:[%s2158_s20 + $0xf0] sm:$0xff] %v1129_v8  ;;  %v1132_v12 = vadd.f32 %v1551_v11, %v2154_v14  ;;  %v1123_v13 = vpop.f32.mrb[47].mxu0 }
 0x355   : > { %1163 = vst [vmem:[%s2158_s20 + $0xe0] sm:$0xff] %v1121_v10  ;;  %v1124_v15 = vadd.f32 %v2154_v14, %v1123_v13 }
 0x356   : > { %1166 = vst [vmem:[%s2158_s20 + $0xf8] sm:$0xff] %v1132_v12 }
 0x357   : > { %1164 = vst [vmem:[%s2158_s20 + $0xe8] sm:$0xff] %v1124_v15 }
 0x358   : > { %1778 = shalt.err (!%p1775_p1)
}
 0x359   : > { %s1779_s17 = scalar_lea.hbm %s2223_s28, 4096  ;;  %s1783_s30 = scalar_lea.hbm %s2276_s3, 8192 }
 0x35a   : > { %p1780_p13 = scmp.ne.s32.totalorder %s2223_s28, %s1779_s17  ;;  %p1784_p4 = scmp.lt.u32.totalorder %s2223_s28, %s2276_s3 }
 0x35b   : > { %p1785_p5 = scmp.lt.u32.totalorder %s1783_s30, %s1779_s17  ;;  %p1787_p11 = scmp.lt.u32.totalorder %s1779_s17, %s2223_s28 }
 0x35c   : > { %p1781_p6 = pnand %p1780_p13, %p2290_p0 }
 0x35d   : > { %p1786_p8 = por %p1785_p5, %p1784_p4 }
 0x35e   : > { %p1782_p10 = pneg %p1781_p6 }
 0x35f   : > { %p1788_p2 = por %p1787_p11, %p1786_p8 }
 0x361   : > { %p1789_p3 = pnand %p1788_p2, %p1782_p10 }
 0x363   : > { %1792 = shalt.err (!%p1789_p3)
}
 0x364   : > { %s1843_s18 = smov 128   ;;  %s1844_s20 = smov 8  }
 0x365   : > { %1578 = dma.vmem_to_hbm [thread:$0]  (%p2290_p0), %s2225_s8, 4096, %s2223_s28, %s1168_s16, %s1843_s18, %s1843_s18, %s1844_s20  }
 0x366 PF: > { %s1196_s7 = sand.u32 1, %s1823_s12   ;;  %p2291_p7 = scmp.ne.s32.totalorder %s2281_s19, 0 }
 0x367   : > { %p2292_p9 = scmp.ge.s32.totalorder %s1835_s15, 2  ;;  %s1197_s24 = scalar_lea.sflag [#allocation4], %s1196_s7 }
 0x369   : > { %p1592_p12 = pnand %p2292_p9, %p2291_p7 }
 0x36b   : > { %1818 = dma.done.wait (!%p1592_p12), %s1197_s24, 4096  }
 0x36c   : > { %1820 = vsyncadd (!%p1592_p12), %s1197_s24, 4294963200  ;;  %p17_p1 = scmp.ge.s32.totalorder %s1978_s4, 4   ;;  %s2293_s12 = smov %s1827_s13 }
 0x36d   : > { %s2294_s13 = smov %s1831_s14  ;;  %s2295_s14 = smov %s1994_s9 }
 0x36e   : > { %s2296_s15 = smov %s1978_s4  ;;  %19 = sbr.rel (!%p17_p1) target bundleno = 6 (0x6), region = 87 }
 0x375   :  { %1202 = vsyncpa [#allocation3], 1 }
 0x376   :  { %1204 = vsyncpa [#allocation3 + $0x1], 1 }
 0x377   :  { %1205 = vsyncpa [#allocation6], 1 }
 0x378   :  { %1206 = vsyncpa [#allocation4], 1 }
 0x379   :  { %1208 = vsyncpa [#allocation4 + $0x1], 1 }

</bundles_post_ra>
